<compile_context>
chip_gen: v5e
topology: v5e:2x2
jax: 0.10.0
libtpu: 0.0.40
codegen_flags: <defaults>
</compile_context>

<pallas_src>
import math

import jax
import jax.numpy as jnp
import numpy as np
from jax.experimental import pallas as pl
from jax.experimental.pallas import tpu as pltpu

LANE = 128     # TPU vreg lane width (last-dim tiling unit)
SUBLANE = 8    # TPU vreg sublane count (second-to-last tiling unit)


# -----------------------------------------------------------------------------
# "__init__": build the sinusoidal position-encoding buffer (deterministic).
# -----------------------------------------------------------------------------
def make_pe_buffer(d_model: int, max_shape=(256, 256), temp_bug_fix: bool = True):
    """Reproduces PositionEncodingSine.__init__ buffer `pe`:
    shape (1, d_model, *max_shape), dtype float32."""
    Hm, Wm = max_shape
    ones = jnp.ones((Hm, Wm), dtype=jnp.float32)
    y_position = jnp.cumsum(ones, axis=0)[None]  # (1, Hm, Wm)
    x_position = jnp.cumsum(ones, axis=1)[None]  # (1, Hm, Wm)

    if temp_bug_fix:
        div_term = jnp.exp(
            jnp.arange(0, d_model // 2, 2, dtype=jnp.float32)
            * (-math.log(10000.0) / (d_model // 2))
        )
    else:
        # Intentionally reproduces the original LoFTR floor-division bug
        # ((-log(1e4)/d_model) // 2) for parity with the PyTorch module.
        div_term = jnp.exp(
            jnp.arange(0, d_model // 2, 2, dtype=jnp.float32)
            * (-math.log(10000.0) / d_model // 2)
        )
    div_term = div_term[:, None, None]  # (d_model//4, 1, 1)

    pe = jnp.zeros((d_model, Hm, Wm), dtype=jnp.float32)
    pe = pe.at[0::4, :, :].set(jnp.sin(x_position * div_term))
    pe = pe.at[1::4, :, :].set(jnp.cos(x_position * div_term))
    pe = pe.at[2::4, :, :].set(jnp.sin(y_position * div_term))
    pe = pe.at[3::4, :, :].set(jnp.cos(y_position * div_term))
    return pe[None]  # (1, d_model, Hm, Wm)


def prepare_pe(pe_buffer, H: int, W: int, pe_dtype=jnp.float32):
    """Slice the buffer to the active spatial extent (done ONCE per (H, W) and
    cached by the module wrapper).

    Returns either
      * (R, 128) lane-dense rows if C*H*W is a multiple of 128 (fast path), or
      * (C, H, W) contiguous NCHW slice otherwise (ragged path, no padding)."""
    _, C, Hm, Wm = pe_buffer.shape
    assert H <= Hm and W <= Wm, (
        f"requested spatial extent ({H},{W}) exceeds max_shape ({Hm},{Wm})")
    pe = pe_buffer[0, :, :H, :W].astype(pe_dtype)  # (C, H, W)
    N = C * H * W
    if N % LANE == 0:
        return pe.reshape(N // LANE, LANE)  # lane-dense (R, 128)
    return pe  # ragged: kernel tiles over channels with full (H, W) blocks


# -----------------------------------------------------------------------------
# Pallas kernel: tiled broadcast add (shared by both layouts).
# -----------------------------------------------------------------------------
def _add_pe_kernel(x_ref, pe_ref, o_ref):
    # jnp promotion handles mixed dtypes (e.g. bf16 pe + f32 x); cast back to out.
    o_ref[...] = (x_ref[...] + pe_ref[...]).astype(o_ref.dtype)


# -----------------------------------------------------------------------------
# Tiling heuristics.
# -----------------------------------------------------------------------------
def _default_tr_max() -> int:
    """Rows (of 128 lanes) per block, per chip generation."""
    try:
        kind = jax.devices()[0].device_kind.lower()
    except Exception:
        return 4096
    if "v5 lite" in kind or "v5e" in kind or "v5lite" in kind:
        return 4096   # 2 MiB f32 blocks; ~12 MiB pipelined under 16 MiB default scope
    if any(t in kind for t in ("v6", "v7", "7x")):
        return 8192   # 4 MiB f32 blocks; ~24 MiB pipelined, fits v7x's 64 MiB VMEM
    if "v5" in kind:  # v5p
        return 8192
    return 4096       # conservative default (v2/v3/v4/unknown)


def _choose_row_tiling(R: int, B: int, tr_max: int):
    """Pick (TR, n_row_blocks): blocks as big as tr_max allows, nudged so the
    total grid-step count is even (v7x megacore balance) when that is cheap."""
    nb = max(1, math.ceil(R / tr_max))
    total = nb * B
    if total % 2 == 1 and R >= 2 * SUBLANE:
        # Odd step count leaves one TensorCore idle on the last block (v7x).
        # Splitting a bit finer is cheap (pe re-reads are tiny) -- do it unless
        # the whole problem is a single small block.
        if total > 1 or R >= 4096:
            nb += 1
    TR = math.ceil(R / nb)
    if nb > 1:
        TR = math.ceil(TR / SUBLANE) * SUBLANE  # sublane-aligned blocks
        nb = math.ceil(R / TR)
    else:
        TR = R  # full extent: always a legal block shape
    return TR, nb


# -----------------------------------------------------------------------------
# Forward paths.
# -----------------------------------------------------------------------------
def _forward_lane_dense(x, pe2d, *, alias_input=False):
    """Fast path: C*H*W % 128 == 0. x reshaped (free) to lane-dense (B, R, 128)."""
    B, C, H, W = x.shape
    N = C * H * W
    R, lane = pe2d.shape
    assert lane == LANE and R * LANE == N, "pe_prepared does not match x's (C, H, W)"

    x3 = x.reshape(B, R, LANE)  # contiguous reshape: no copy
    TR, nb = _choose_row_tiling(R, B, _default_tr_max())
    grid = (nb, B)              # row axis OUTER: pe block index constant over B

    itx = x.dtype.itemsize
    itp = pe2d.dtype.itemsize
    # 3 streams (x in, pe in, out) x double buffer x block, plus headroom.
    vmem_bytes = int(max(2 * TR * LANE * (2 * itx + itp) + (4 << 20), 16 << 20))

    cost = pl.CostEstimate(
        flops=B * N, transcendentals=0,
        bytes_accessed=2 * B * N * itx + N * itp)

    extra = {"input_output_aliases": {0: 0}} if alias_input else {}

    out = pl.pallas_call(
        _add_pe_kernel,
        out_shape=jax.ShapeDtypeStruct((B, R, LANE), x.dtype),
        grid_spec=pltpu.PrefetchScalarGridSpec(
            num_scalar_prefetch=0,
            grid=grid,
            in_specs=[
                # x: batch dim squeezed out, (TR, 128) lane-dense tile per step.
                pl.BlockSpec((None, TR, LANE), lambda r, b: (b, r, 0)),
                # pe: block index independent of b -> fetched once per row block.
                pl.BlockSpec((TR, LANE), lambda r, b: (r, 0)),
            ],
            out_specs=pl.BlockSpec((None, TR, LANE), lambda r, b: (b, r, 0)),
        ),
        compiler_params=pltpu.CompilerParams(
            dimension_semantics=("parallel", "parallel"),
            vmem_limit_bytes=vmem_bytes,
        ),
        cost_estimate=cost,
        **extra,
    )(x3, pe2d)
    return out.reshape(B, C, H, W)


def _forward_nchw(x, pe_chw, *, alias_input=False):
    """Ragged path (C*H*W % 128 != 0): operate directly on NCHW with channel
    blocks and full (H, W) tiles -- no wrapper-side pad/slice copies."""
    B, C, H, W = x.shape
    assert pe_chw.shape == (C, H, W), "pe_prepared does not match x's (C, H, W)"
    itx = x.dtype.itemsize
    itp = pe_chw.dtype.itemsize

    target_block_bytes = (4 << 20) if _default_tr_max() >= 8192 else (2 << 20)
    bytes_per_chan = H * W * itx
    tc = max(1, min(C, target_block_bytes // max(bytes_per_chan, 1)))
    grid = (pl.cdiv(C, tc), B)  # channel axis OUTER: pe block reused over B

    N = C * H * W
    vmem_bytes = int(max(2 * tc * H * W * (2 * itx + itp) + (4 << 20), 16 << 20))
    cost = pl.CostEstimate(
        flops=B * N, transcendentals=0,
        bytes_accessed=2 * B * N * itx + N * itp)

    extra = {"input_output_aliases": {0: 0}} if alias_input else {}

    return pl.pallas_call(
        _add_pe_kernel,
        out_shape=jax.ShapeDtypeStruct((B, C, H, W), x.dtype),
        grid_spec=pltpu.PrefetchScalarGridSpec(
            num_scalar_prefetch=0,
            grid=grid,
            in_specs=[
                pl.BlockSpec((None, tc, H, W), lambda c, b: (b, c, 0, 0)),
                pl.BlockSpec((tc, H, W), lambda c, b: (c, 0, 0)),
            ],
            out_specs=pl.BlockSpec((None, tc, H, W), lambda c, b: (b, c, 0, 0)),
        ),
        compiler_params=pltpu.CompilerParams(
            dimension_semantics=("parallel", "parallel"),
            vmem_limit_bytes=vmem_bytes,
        ),
        cost_estimate=cost,
        **extra,
    )(x, pe_chw)


def position_encoding_sine_forward(x, pe_prepared, *, alias_input=False):
    """x: [B, C, H, W]; pe_prepared: output of prepare_pe for the same (H, W)."""
    B, C, H, W = x.shape
    N = C * H * W
    if pe_prepared.ndim == 2:
        assert pe_prepared.shape == (N // LANE, LANE)
        return _forward_lane_dense(x, pe_prepared, alias_input=alias_input)
    return _forward_nchw(x, pe_prepared, alias_input=alias_input)


# -----------------------------------------------------------------------------
# Module-like wrapper: owns the buffer + per-(H, W) prepared-PE cache.
# -----------------------------------------------------------------------------
class PositionEncodingSine:
    def __init__(self, d_model, max_shape=(256, 256), temp_bug_fix=True,
                 pe_dtype=jnp.float32):
        self.d_model = d_model
        self.pe = make_pe_buffer(d_model, max_shape, temp_bug_fix)
        self.pe_dtype = jnp.dtype(pe_dtype)   # jnp.bfloat16 halves the pe stream
        self._pe_cache = {}                   # (H, W) -> prepared PE

    def _prepared(self, H, W):
        key = (H, W)
        if key not in self._pe_cache:
            self._pe_cache[key] = prepare_pe(self.pe, H, W, self.pe_dtype)
        return self._pe_cache[key]

    def __call__(self, x, donate_x: bool = False):
        B, C, H, W = x.shape
        assert C == self.d_model
        # donate_x=True (with x donated at the jit boundary) writes the result
        # in place over x via input_output_aliases.
        return position_encoding_sine_forward(
            x, self._prepared(H, W), alias_input=donate_x)


# -----------------------------------------------------------------------------
# Pure-JAX reference for verification (mirrors the PyTorch forward).
# -----------------------------------------------------------------------------
def position_encoding_sine_ref(x, pe_buffer):
    return x + pe_buffer[:, :, : x.shape[2], : x.shape[3]]


if __name__ == "__main__":
    key = jax.random.PRNGKey(0)

    # --- Lane-dense fast path: C*H*W divisible by 128 ------------------------
    B, d_model, H, W = 2, 16, 16, 16
    x = jax.random.normal(key, (B, d_model, H, W), dtype=jnp.float32)
    module = PositionEncodingSine(d_model, max_shape=(64, 64), temp_bug_fix=True)
    out = jax.block_until_ready(module(x))
    ref = position_encoding_sine_ref(x, module.pe)
    np.testing.assert_allclose(np.asarray(out), np.asarray(ref), rtol=1e-6, atol=1e-6)

    # --- Ragged path: C*H*W % 128 != 0 (direct NCHW kernel, no pad copies) ---
    B2, d2, H2, W2 = 2, 12, 10, 10
    x2 = jax.random.normal(jax.random.PRNGKey(0), (B2, d2, H2, W2), dtype=jnp.float32)
    module2 = PositionEncodingSine(d2, max_shape=(32, 32), temp_bug_fix=True)
    out2 = jax.block_until_ready(module2(x2))
    ref2 = position_encoding_sine_ref(x2, module2.pe)
    np.testing.assert_allclose(np.asarray(out2), np.asarray(ref2), rtol=1e-6, atol=1e-6)

    print("KERNEL_OK")
</pallas_src>

<mosaic_0001>
module attributes {stable_mosaic.version = 11 : i64} {
  func.func @_add_pe_kernel(%arg0: i32, %arg1: i32, %arg2: memref<1x32x128xf32, #tpu.memory_space<vmem>>, %arg3: memref<32x128xf32, #tpu.memory_space<vmem>>, %arg4: memref<1x32x128xf32, #tpu.memory_space<vmem>>) attributes {dimension_semantics = [#tpu.dimension_semantics<parallel>, #tpu.dimension_semantics<parallel>], iteration_bounds = array<i64: 1, 2>, scalar_prefetch = 0 : i64, scratch_operands = 0 : i64, tpu.core_type = #tpu.core_type<tc>, window_params = [{transform_indices = @transform_0, window_bounds = array<i64: 1, 32, 128>}, {transform_indices = @transform_1, window_bounds = array<i64: 32, 128>}, {transform_indices = @transform_2, window_bounds = array<i64: 1, 32, 128>}]} {
    %c0 = arith.constant 0 : index
    %c0_0 = arith.constant 0 : index
    %c0_1 = arith.constant 0 : index
    %0 = vector.load %arg2[%c0, %c0_0, %c0_1] : memref<1x32x128xf32, #tpu.memory_space<vmem>>, vector<1x32x128xf32>
    %1 = vector.shape_cast %0 : vector<1x32x128xf32> to vector<32x128xf32>
    %c0_2 = arith.constant 0 : index
    %c0_3 = arith.constant 0 : index
    %2 = vector.load %arg3[%c0_2, %c0_3] : memref<32x128xf32, #tpu.memory_space<vmem>>, vector<32x128xf32>
    %3 = arith.addf %1, %2 : vector<32x128xf32>
    %c0_4 = arith.constant 0 : index
    %c0_5 = arith.constant 0 : index
    %c0_6 = arith.constant 0 : index
    %4 = vector.load %arg4[%c0_4, %c0_5, %c0_6] : memref<1x32x128xf32, #tpu.memory_space<vmem>>, vector<1x32x128xf32>
    %5 = vector.shape_cast %4 : vector<1x32x128xf32> to vector<32x128xf32>
    %6 = vector.shape_cast %3 : vector<32x128xf32> to vector<1x32x128xf32>
    tpu.vector_store %arg4[%c0_4, %c0_5, %c0_6], %6 {strides = array<i32>} : memref<1x32x128xf32, #tpu.memory_space<vmem>>, vector<1x32x128xf32>,
    return
  }
  func.func @transform_0(%arg0: i32, %arg1: i32) -> (i32, i32, i32) {
    %c0_i32 = arith.constant 0 : i32
    %c0_i32_0 = arith.constant 0 : i32
    return %arg1, %arg0, %c0_i32 : i32, i32, i32
  }
  func.func @transform_1(%arg0: i32, %arg1: i32) -> (i32, i32) {
    %c0_i32 = arith.constant 0 : i32
    %c0_i32_0 = arith.constant 0 : i32
    return %arg0, %c0_i32 : i32, i32
  }
  func.func @transform_2(%arg0: i32, %arg1: i32) -> (i32, i32, i32) {
    %c0_i32 = arith.constant 0 : i32
    %c0_i32_0 = arith.constant 0 : i32
    return %arg1, %arg0, %c0_i32 : i32, i32, i32
  }
}

</mosaic_0001>

<bundles_post_ra>
// kernel: tpu_custom_call.1
= control target key start
LH: loop header
LB: loop body
LE: loop exit
PB: predicated region body
PF: predicated region fallthrough
CT: control target
= control target key end

     0   :  { %7 = vsyncpa [#allocation3], 0  ;;  %s762_s0 = inlined_call_operand.hbm [shape: f32[2,32,128], index: 0, kind: input, shape index: {}]   ;;  %s763_s1 = inlined_call_operand.hbm [shape: f32[32,128], index: 1, kind: input, shape index: {}]   ;;  %s764_s2 = inlined_call_operand.hbm [shape: f32[2,32,128], index: 2, kind: output, shape index: {}]  }
   0x1   :  { %9 = vsyncpa [#allocation3 + $0x1], 0 }
   0x2   :  { %10 = vsyncpa [#allocation6], 0 }
   0x3   :  { %11 = vsyncpa [#allocation4], 0 }
   0x4   :  { %13 = vsyncpa [#allocation4 + $0x1], 0  ;;  %s607_s9 = smov 0   ;;  %s609_s10 = smov 0  }
   0x5   :  { %s611_s11 = smov 0   ;;  %s613_s12 = smov 0  }
   0x6   :  { %s615_s13 = smov 0   ;;  %s617_s14 = smov 0  }
   0x7 LB: > { %s343_s15 = sadd.s32 4294967295, %s585_s14   ;;  %s344_s16 = sadd.s32 4294967294, %s585_s14   ;;  %s585_s14 = sphi %s617_s14, %s19_s14   ;;  %s581_s13 = sphi %s615_s13, %s776_s13   ;;  %s577_s12 = sphi %s613_s12, %s775_s12   ;;  %s573_s11 = sphi %s611_s11, %s774_s11   ;;  %s569_s10 = sphi %s609_s10, %s773_s10   ;;  %s565_s9 = sphi %s607_s9, %s772_s9  }
   0x8   : > { %p53_p0 = scmp.ne.s32.totalorder %s569_s10, %s565_s9  ;;  %p641_p1 = scmp.eq.s32.totalorder %s343_s15, 0 }
   0x9   : > { %p645_p2 = scmp.eq.s32.totalorder %s343_s15, 1  ;;  %p111_p3 = scmp.eq.s32.totalorder %s344_s16, 1 }
   0xa   : > { %p651_p4 = por %p641_p1, %p53_p0  ;;  %p345_p5 = scmp.ge.s32.totalorder %s585_s14, 1 }
   0xb   : > { %p656_p6 = por %p111_p3, %p53_p0  ;;  %p118_p7 = scmp.lt.s32.totalorder %s585_s14, 3 }
   0xc   : > { %s132_s23 = sshll.u32 %s763_s1, 4  ;;  %s587_s25 = smov [#allocation5]   ;;  %s133_s23 = int_to_ptr.hbm [resolvable:$true] %s132_s23 }
   0xd   : > { %p664_p8 = pnand %p345_p5, %p118_p7  ;;  %s134_s26 = sshll.u32 %s587_s25, 4  ;;  %s135_s26 = int_to_ptr.vmem [resolvable:$true] %s134_s26 }
   0xe   : > { %p347_p11 = scmp.ge.s32.totalorder %s585_s14, 2  ;;  %s588_s27 = smov 128  }
   0xf   : > { %p370_p9 = pneg %p664_p8  ;;  %s589_s28 = smov 8  }
  0x10   : > { %s28_s29 = sadd.s32 1, %s581_s13  ;;  %s40_s30 = sadd.s32 1, %s573_s11 }
  0x11   : > { %p371_p10 = pnand %p370_p9, %p641_p1  ;;  %p29_p12 = scmp.ge.s32.totalorder %s28_s29, 2 }
  0x12   : > { %p47_p13 = scmp.ne.s32.totalorder %s573_s11, %s569_s10  ;;  %p48_p0 = scmp.eq.s32.totalorder %s585_s14, 0 }
  0x13   : > { %373 = dma.hbm_to_vmem [thread:$0]  (!%p371_p10), %s133_s23, 512, %s135_s26, [#allocation6], %s588_s27, %s588_s27, %s589_s28  }
  0x14   : > { %s778_s29 = smov (%p29_p12, %s28_s29), 0  ;;  %p683_p3 = por %p48_p0, %p47_p13 }
  0x15   : > { %p689_p5 = por %p645_p2, %p47_p13  ;;  %s35_s5 = ssub.s32 %s581_s13, %s778_s29 }
  0x16   : > { %p383_p7 = scmp.lt.s32.totalorder %s585_s14, 2  ;;  %p38_p9 = scmp.eq.s32.totalorder %s35_s5, 0 }
  0x17   : > { %s148_s6 = sand.u32 1, %s573_s11   ;;  %s360_s15 = sshll.u32 %s581_s13, 5 }
  0x18   : > { %s348_s7 = sshll.u32 %s148_s6, 5  ;;  %s159_s22 = scalar_lea.hbm %s762_s0, %s360_s15 }
  0x19   : > { %s698_s8 = scalar_select %p38_p9, %s573_s11, %s40_s30  }
  0x1a   : > { %s152_s23 = scalar_lea.vmem [#allocation2], %s348_s7  ;;  %s160_s18 = sshll.u32 %s159_s22, 4  ;;  %s161_s18 = int_to_ptr.hbm [resolvable:$true] %s160_s18 }
  0x1b   : > { %s162_s25 = sshll.u32 %s152_s23, 4  ;;  %p375_p2 = pnand %p383_p7, %p683_p3  ;;  %s163_s25 = int_to_ptr.vmem [resolvable:$true] %s162_s25 }
  0x1c   : > { %s149_s26 = scalar_lea.sflag [#allocation3], %s148_s6  ;;  %174 = sbr.rel (%p664_p8) target bundleno = 52 (0x34), region = 28 }
  0x1d   : > { %377 = dma.hbm_to_vmem [thread:$0]  (!%p375_p2), %s161_s18, 512, %s163_s25, %s149_s26, %s588_s27, %s588_s27, %s589_s28  }
  0x1e   : > { %s712_s30 = sand.u32 (!%p664_p8), 1, %s569_s10  }
  0x1f   : > { %s352_s5 = sshll.u32 (!%p664_p8), %s712_s30, 5  ;;  %s177_s7 = scalar_lea.sflag (!%p664_p8), [#allocation3], %s712_s30 }
  0x20   : > { %s180_s15 = scalar_lea.vmem (!%p664_p8), [#allocation2], %s352_s5 }
  0x21   : > { %552 = dma.done.wait (%p651_p4), %s177_s7, 512  }
  0x22   : > { %554 = vsyncadd (%p651_p4), %s177_s7, 4294966784 }
  0x23   : > { %556 = dma.done.wait (%p641_p1), [#allocation6], 512  }
  0x24   : > { %558 = vsyncadd (%p641_p1), [#allocation6], 4294966784  ;;  %s361_s24 = sshll.u32 %s577_s12, 5  ;;  %v210_v0 = vld [vmem:[%s180_s15] sm:$0xff]  ;;  %s206_s6 = scalar_lea.vmem [#allocation7], %s352_s5  ;;  %v211_v2 = vld [vmem:[%s180_s15 + $0x8] sm:$0xff] }
  0x25   : > { %s240_s3 = scalar_lea.hbm %s764_s2, %s361_s24  ;;  %v214_v1 = vld [vmem:[#allocation5] sm:$0xff]  ;;  %s241_s16 = sshll.u32 %s206_s6, 4  ;;  %v215_v4 = vld [vmem:[#allocation5 + $0x8] sm:$0xff]  ;;  %v212_v5 = vld [vmem:[%s180_s15 + $0x10] sm:$0xff]  ;;  %s242_s16 = int_to_ptr.vmem [resolvable:$true] %s241_s16 }
  0x26   : > { %v218_v3 = vadd.f32 %v214_v1, %v210_v0  ;;  %v216_v6 = vld [vmem:[#allocation5 + $0x10] sm:$0xff]  ;;  %s243_s19 = sshll.u32 %s240_s3, 4  ;;  %v219_v7 = vadd.f32 %v215_v4, %v211_v2  ;;  %v213_v9 = vld [vmem:[%s180_s15 + $0x18] sm:$0xff]  ;;  %s227_s12 = scalar_lea.sflag [#allocation4], %s712_s30  ;;  %s244_s19 = int_to_ptr.hbm [resolvable:$true] %s243_s19 }
  0x27   : > { %v220_v8 = vadd.f32 %v216_v6, %v212_v5  ;;  %v217_v10 = vld [vmem:[#allocation5 + $0x18] sm:$0xff]  ;;  %s513_s17 = sshra.s32 %s244_s19, 4  ;;  %s519_s25 = scalar_lea.hbm %s764_s2, 64  ;;  %s514_s17 = int_to_ptr.hbm [resolvable:$true] %s513_s17 }
  0x28   : > { %222 = vst [vmem:[%s206_s6] sm:$0xff] %v218_v3  ;;  %v221_v11 = vadd.f32 %v217_v10, %v213_v9  ;;  %s515_s21 = scalar_lea.hbm %s514_s17, 32  ;;  %p520_p10 = scmp.lt.s32.totalorder %s514_s17, %s764_s2 }
  0x29   : > { %223 = vst [vmem:[%s206_s6 + $0x8] sm:$0xff] %v219_v7  ;;  %p516_p1 = scmp.ne.s32.totalorder %s514_s17, %s515_s21  ;;  %p521_p12 = scmp.lt.s32.totalorder %s519_s25, %s515_s21 }
  0x2a   : > { %224 = vst [vmem:[%s206_s6 + $0x10] sm:$0xff] %v220_v8 }
  0x2b   : > { %225 = vst [vmem:[%s206_s6 + $0x18] sm:$0xff] %v221_v11  ;;  %p517_p4 = pnand %p516_p1, %p689_p5  ;;  %p522_p13 = por %p521_p12, %p520_p10 }
  0x2d   : > { %p518_p8 = pneg %p517_p4 }
  0x2f   : > { %p523_p0 = pnand %p522_p13, %p518_p8 }
  0x31   : > { %526 = shalt.err (!%p523_p0)
}
  0x32   : > { %s590_s30 = smov 128   ;;  %s591_s5 = smov 8  }
  0x33   : > { %368 = dma.vmem_to_hbm [thread:$0]  (%p689_p5), %s242_s16, 512, %s244_s19, %s227_s12, %s590_s30, %s590_s30, %s591_s5  }
  0x34 PF: > { %s258_s7 = sand.u32 1, %s565_s9   ;;  %p379_p3 = pnand %p347_p11, %p656_p6 }
  0x35   : > { %s259_s15 = scalar_lea.sflag [#allocation4], %s258_s7 }
  0x36   : > { %p380_p7 = pneg %p379_p3 }
  0x38   : > { %560 = dma.done.wait (%p380_p7), %s259_s15, 512  }
  0x39   : > { %562 = vsyncadd (%p380_p7), %s259_s15, 4294966784  ;;  %s19_s14 = sadd.s32 1, %s585_s14   ;;  %s772_s9 = smov %s569_s10 }
  0x3a   : > { %p16_p9 = scmp.ge.s32.totalorder %s19_s14, 4   ;;  %s773_s10 = smov %s573_s11 }
  0x3b   : > { %s774_s11 = smov %s698_s8  ;;  %s775_s12 = smov %s581_s13 }
  0x3c   : > { %s776_s13 = smov %s778_s29  ;;  %18 = sbr.rel (!%p16_p9) target bundleno = 7 (0x7), region = 78 }
  0x41   :  { %265 = vsyncpa [#allocation3], 1 }
  0x42   :  { %267 = vsyncpa [#allocation3 + $0x1], 1 }
  0x43   :  { %268 = vsyncpa [#allocation6], 1 }
  0x44   :  { %269 = vsyncpa [#allocation4], 1 }
  0x45   :  { %271 = vsyncpa [#allocation4 + $0x1], 1 }

</bundles_post_ra>
